<compile_context>
chip_gen: v5e
topology: v5e:2x2
jax: 0.10.0
libtpu: 0.0.40
codegen_flags: <defaults>
</compile_context>

<pallas_src>
import functools

import jax
import jax.numpy as jnp
from jax import lax
from jax.experimental import pallas as pl
from jax.experimental.pallas import tpu as pltpu


def _center_loss_kernel(batch_size, tile_rows,
                        pred_ref,   # VMEM (tile_rows, D_pad)  streamed
                        ctr_ref,    # VMEM (tile_rows, D_pad)  streamed (pre-gathered)
                        out_ref):   # VMEM (1, 1, 128) f32 per-tile partial
    i = pl.program_id(0)

    diff = pred_ref[...].astype(jnp.float32) - ctr_ref[...].astype(jnp.float32)
    d = jnp.sum(diff * diff, axis=1, keepdims=True)          # (tile_rows, 1)
    d = jnp.clip(d, 1e-12, 1e12)                             # PyTorch clamp

    # Zero out rows past the real batch size (padded rows).
    row_ids = i * tile_rows + lax.broadcasted_iota(jnp.int32, (tile_rows, 1), 0)
    d = jnp.where(row_ids < batch_size, d, 0.0)

    tile_sum = jnp.sum(d)                                     # scalar partial
    # Lane-dense unmasked store of the tile partial (wrapper reads lane 0).
    out_ref[...] = jnp.broadcast_to(tile_sum.astype(jnp.float32), (1, 1, 128))


def _pick_tile_rows(batch, d_pad, itemsize, requested):
    """Multiple of 8; >=2 grid steps when possible; fits default scoped VMEM."""
    t = min(requested, ((batch + 7) // 8) * 8)
    t = max(8, (t // 8) * 8)
    # Keep the grid >= 2 steps so v7x's two TensorCores both get work.
    while t > 8 and pl.cdiv(batch, t) < 2:
        t = max(8, ((t // 2) // 8) * 8)
    # 2 input streams x 2 pipeline buffers must fit comfortably in scoped VMEM.
    budget_bytes = 24 * 1024 * 1024
    while t > 8 and 2 * 2 * t * d_pad * itemsize > budget_bytes:
        t = max(8, ((t // 2) // 8) * 8)
    return t


def center_loss(pred, centers, target, *, tile_rows=512):
    """pred: (B, D), centers: (C, D), target: (B,) int labels -> scalar f32."""
    B, D = pred.shape
    C, D2 = centers.shape
    assert D == D2

    # Gather the needed center rows once (contiguous, streamable).  mode="clip"
    # guards against out-of-range labels ever producing OOB accesses.
    gathered = jnp.take(centers, target.astype(jnp.int32), axis=0, mode="clip")

    # Pad the feature dim to a lane-dense multiple of 128 (zeros on both
    # streams -> zero contribution to the squared distance).
    D_pad = max(128, ((D + 127) // 128) * 128)

    itemsize = max(jnp.dtype(pred.dtype).itemsize, jnp.dtype(centers.dtype).itemsize)
    tile_rows = _pick_tile_rows(B, D_pad, itemsize, tile_rows)

    B_pad = pl.cdiv(B, tile_rows) * tile_rows
    num_tiles = B_pad // tile_rows

    pred_p = jnp.pad(pred, ((0, B_pad - B), (0, D_pad - D)))
    ctr_p = jnp.pad(gathered, ((0, B_pad - B), (0, D_pad - D)))

    kernel = functools.partial(_center_loss_kernel, B, tile_rows)

    grid_spec = pltpu.PrefetchScalarGridSpec(
        num_scalar_prefetch=0,
        grid=(num_tiles,),
        in_specs=[
            pl.BlockSpec((tile_rows, D_pad), lambda i: (i, 0)),   # pred tile
            pl.BlockSpec((tile_rows, D_pad), lambda i: (i, 0)),   # gathered centers
        ],
        out_specs=pl.BlockSpec((1, 1, 128), lambda i: (i, 0, 0)),
    )

    per_tile = pl.pallas_call(
        kernel,
        out_shape=jax.ShapeDtypeStruct((num_tiles, 1, 128), jnp.float32),
        grid_spec=grid_spec,
        compiler_params=pltpu.CompilerParams(
            dimension_semantics=("parallel",)),
        cost_estimate=pl.CostEstimate(
            flops=3 * B_pad * D_pad,
            transcendentals=0,
            bytes_accessed=(B_pad * D_pad * jnp.dtype(pred.dtype).itemsize
                            + B_pad * D_pad * jnp.dtype(centers.dtype).itemsize
                            + num_tiles * 128 * 4),
        ),
    )(pred_p, ctr_p)

    # Sum the per-tile partials (lane 0 of each tile's row).
    loss = jnp.sum(per_tile[:, 0, 0])
    # PyTorch clamps AFTER masking: every zeroed (non-matching) distmat entry
    # contributes the 1e-12 floor.  Add that constant back exactly.
    loss = loss + jnp.float32(B * (C - 1)) * jnp.float32(1e-12)
    return loss


def _reference_center_loss(pred, centers, target):
    """Pure-JAX mirror of the PyTorch forward (distmat + mask + clamp + sum)."""
    C = centers.shape[0]
    distmat = (
        jnp.sum(pred.astype(jnp.float32) ** 2, axis=1, keepdims=True)
        + jnp.sum(centers.astype(jnp.float32) ** 2, axis=1, keepdims=True).T
        - 2.0 * pred.astype(jnp.float32) @ centers.astype(jnp.float32).T
    )
    mask = (target[:, None] == jnp.arange(C)[None, :]).astype(jnp.float32)
    return jnp.sum(jnp.clip(distmat * mask, 1e-12, 1e12))


if __name__ == "__main__":
    # Small deterministic example consistent with the module's forward:
    #   pred:    (batch=12, feat_dim=32)
    #   target:  (batch=12,) int labels in [0, num_classes)
    #   centers: (num_classes=16, feat_dim=32)  (the nn.Parameter)
    # batch=12 is deliberately not a multiple of 8 to exercise the padded-row
    # masking path; feat_dim=32 exercises the lane padding path.
    num_classes, feat_dim, batch = 16, 32, 12

    key = jax.random.PRNGKey(0)
    k_pred, k_cent, k_tgt = jax.random.split(key, 3)
    pred = jax.random.normal(k_pred, (batch, feat_dim), dtype=jnp.float32)
    centers = jax.random.normal(k_cent, (num_classes, feat_dim), dtype=jnp.float32)
    target = jax.random.randint(k_tgt, (batch,), 0, num_classes, dtype=jnp.int32)

    loss = center_loss(pred, centers, target)
    loss = jax.block_until_ready(loss)

    ref = _reference_center_loss(pred, centers, target)
    assert jnp.allclose(loss, ref, rtol=1e-5, atol=1e-5), (loss, ref)

    print("KERNEL_OK")
</pallas_src>

<mosaic_0001>
module attributes {stable_mosaic.version = 11 : i64} {
  func.func @_center_loss_kernel(%arg0: i32, %arg1: memref<8x128xf32, #tpu.memory_space<vmem>>, %arg2: memref<8x128xf32, #tpu.memory_space<vmem>>, %arg3: memref<1x1x128xf32, #tpu.memory_space<vmem>>) attributes {dimension_semantics = [#tpu.dimension_semantics<parallel>], iteration_bounds = array<i64: 2>, scalar_prefetch = 0 : i64, scratch_operands = 0 : i64, tpu.core_type = #tpu.core_type<tc>, window_params = [{transform_indices = @transform_0, window_bounds = array<i64: 8, 128>}, {transform_indices = @transform_1, window_bounds = array<i64: 8, 128>}, {transform_indices = @transform_2, window_bounds = array<i64: 1, 1, 128>}]} {
    %c0 = arith.constant 0 : index
    %c0_0 = arith.constant 0 : index
    %0 = vector.load %arg1[%c0, %c0_0] : memref<8x128xf32, #tpu.memory_space<vmem>>, vector<8x128xf32>
    %c0_1 = arith.constant 0 : index
    %c0_2 = arith.constant 0 : index
    %1 = vector.load %arg2[%c0_1, %c0_2] : memref<8x128xf32, #tpu.memory_space<vmem>>, vector<8x128xf32>
    %2 = arith.subf %0, %1 : vector<8x128xf32>
    %3 = arith.mulf %2, %2 : vector<8x128xf32>
    %cst = arith.constant dense<0.000000e+00> : vector<8xf32>
    %4 = vector.multi_reduction <add>, %3, %cst [1] : vector<8x128xf32> to vector<8xf32>
    %5 = vector.shape_cast %4 : vector<8xf32> to vector<8x1xf32>
    %cst_3 = arith.constant 9.99999996E-13 : f32
    %cst_4 = arith.constant 9.99999995E+11 : f32
    %6 = vector.broadcast %cst_3 : f32 to vector<8x1xf32>
    %7 = arith.maximumf %6, %5 : vector<8x1xf32>
    %8 = vector.broadcast %cst_4 : f32 to vector<8x1xf32>
    %9 = arith.minimumf %8, %7 : vector<8x1xf32>
    %c8_i32 = arith.constant 8 : i32
    %10 = arith.muli %arg0, %c8_i32 : i32
    %11 = tpu.iota {dimensions = array<i32: 0>} : vector<8x1xi32>
    %12 = vector.broadcast %10 : i32 to vector<8x1xi32>
    %13 = arith.addi %12, %11 : vector<8x1xi32>
    %c12_i32 = arith.constant 12 : i32
    %14 = vector.broadcast %c12_i32 : i32 to vector<8x1xi32>
    %15 = arith.cmpi slt, %13, %14 : vector<8x1xi32>
    %cst_5 = arith.constant 0.000000e+00 : f32
    %16 = vector.broadcast %cst_5 : f32 to vector<8x1xf32>
    %17 = arith.select %15, %9, %16 : vector<8x1xi1>, vector<8x1xf32>
    %18 = vector.shape_cast %17 : vector<8x1xf32> to vector<1x8x1xf32>
    %cst_6 = arith.constant dense<0.000000e+00> : vector<1xf32>
    %19 = vector.multi_reduction <add>, %18, %cst_6 [1, 2] : vector<1x8x1xf32> to vector<1xf32>
    %20 = vector.shape_cast %19 : vector<1xf32> to vector<1x1x1xf32>
    %21 = vector.extract %20[0, 0, 0] : f32 from vector<1x1x1xf32>
    %22 = vector.broadcast %21 : f32 to vector<1x1x128xf32>
    %c0_7 = arith.constant 0 : index
    %c0_8 = arith.constant 0 : index
    %c0_9 = arith.constant 0 : index
    %23 = vector.load %arg3[%c0_7, %c0_8, %c0_9] : memref<1x1x128xf32, #tpu.memory_space<vmem>>, vector<1x1x128xf32>
    tpu.vector_store %arg3[%c0_7, %c0_8, %c0_9], %22 {strides = array<i32>} : memref<1x1x128xf32, #tpu.memory_space<vmem>>, vector<1x1x128xf32>,
    return
  }
  func.func @transform_0(%arg0: i32) -> (i32, i32) {
    %c0_i32 = arith.constant 0 : i32
    %c0_i32_0 = arith.constant 0 : i32
    return %arg0, %c0_i32 : i32, i32
  }
  func.func @transform_1(%arg0: i32) -> (i32, i32) {
    %c0_i32 = arith.constant 0 : i32
    %c0_i32_0 = arith.constant 0 : i32
    return %arg0, %c0_i32 : i32, i32
  }
  func.func @transform_2(%arg0: i32) -> (i32, i32, i32) {
    %c0_i32 = arith.constant 0 : i32
    %c0_i32_0 = arith.constant 0 : i32
    %c0_i32_1 = arith.constant 0 : i32
    return %arg0, %c0_i32, %c0_i32_0 : i32, i32, i32
  }
}

</mosaic_0001>

<bundles_post_ra>
// kernel: tpu_custom_call.1
= control target key start
LH: loop header
LB: loop body
LE: loop exit
PB: predicated region body
PF: predicated region fallthrough
CT: control target
= control target key end

     0   :  { %7 = vsyncpa [#allocation3], 0  ;;  %s704_s0 = inlined_call_operand.hbm [shape: f32[16,128], index: 0, kind: input, shape index: {}]   ;;  %s705_s1 = inlined_call_operand.hbm [shape: f32[16,128], index: 1, kind: input, shape index: {}]   ;;  %s706_s2 = inlined_call_operand.hbm [shape: f32[2,1,128], index: 2, kind: output, shape index: {}]  }
   0x1   :  { %9 = vsyncpa [#allocation3 + $0x1], 0 }
   0x2   :  { %10 = vsyncpa [#allocation6], 0 }
   0x3   :  { %12 = vsyncpa [#allocation6 + $0x1], 0 }
   0x4   :  { %13 = vsyncpa [#allocation4], 0 }
   0x5   :  { %15 = vsyncpa [#allocation4 + $0x1], 0  ;;  %s542_s9 = smov 0   ;;  %s544_s10 = smov 0  }
   0x6   :  { %s546_s11 = smov 0   ;;  %s548_s12 = smov 0  }
   0x7 LB: > { %s563_s13 = sadd.s32 4294967295, %s525_s12   ;;  %s329_s14 = sadd.s32 4294967294, %s525_s12   ;;  %s525_s12 = sphi %s548_s12, %s717_s12   ;;  %s521_s11 = sphi %s546_s11, %s716_s11   ;;  %s517_s10 = sphi %s544_s10, %s715_s10   ;;  %s513_s9 = sphi %s542_s9, %s714_s9  }
   0x8   : > { %s567_s15 = sadd.s32 1, %s525_s12   ;;  %s28_s16 = sadd.s32 1, %s521_s11 }
   0x9   : > { %s25_s17 = ssub.s32 %s525_s12, %s567_s15  ;;  %p35_p0 = scmp.ne.s32.totalorder %s521_s11, %s517_s10 }
   0xa   : > { %p26_p1 = scmp.eq.s32.totalorder %s25_s17, 0  ;;  %p36_p2 = scmp.eq.s32.totalorder %s525_s12, 0 }
   0xb   : > { %p41_p3 = scmp.ne.s32.totalorder %s517_s10, %s513_s9  ;;  %p42_p4 = scmp.eq.s32.totalorder %s563_s13, 0 }
   0xc   : > { %s579_s18 = scalar_select %p26_p1, %s521_s11, %s28_s16  }
   0xd   : > { %p581_p5 = por %p36_p2, %p35_p0  ;;  %p585_p6 = por %p42_p4, %p41_p3 }
   0xe   : > { %p91_p7 = scmp.eq.s32.totalorder %s563_s13, 1  ;;  %p97_p8 = scmp.eq.s32.totalorder %s329_s14, 1 }
   0xf   : > { %p361_p10 = scmp.lt.s32.totalorder %s525_s12, 2  ;;  %s601_s23 = sand.u32 1, %s521_s11  }
  0x10   : > { %p592_p11 = por %p91_p7, %p35_p0  ;;  %p596_p12 = por %p97_p8, %p41_p3 }
  0x11   : > { %s333_s24 = sshll.u32 %s525_s12, 3  ;;  %s332_s25 = sshll.u32 %s601_s23, 3 }
  0x12   : > { %s125_s28 = scalar_lea.hbm %s704_s0, %s333_s24  ;;  %s121_s30 = scalar_lea.vmem [#allocation2], %s332_s25 }
  0x13   : > { %s127_s29 = sshll.u32 %s125_s28, 4  ;;  %s129_s3 = sshll.u32 %s121_s30, 4  ;;  %s128_s29 = int_to_ptr.hbm [resolvable:$true] %s127_s29  ;;  %s130_s3 = int_to_ptr.vmem [resolvable:$true] %s129_s3 }
  0x14   : > { %p610_p13 = pnand %p361_p10, %p581_p5  ;;  %p336_p0 = scmp.ge.s32.totalorder %s525_s12, 1 }
  0x15   : > { %p153_p1 = scmp.lt.s32.totalorder %s525_s12, 3  ;;  %s118_s5 = scalar_lea.sflag [#allocation3], %s601_s23 }
  0x16   : > { %s395_s6 = sshra.s32 %s128_s29, 4  ;;  %p399_p3 = pneg %p610_p13  ;;  %s396_s6 = int_to_ptr.hbm [resolvable:$true] %s395_s6 }
  0x17   : > { %s397_s7 = scalar_lea.hbm %s396_s6, 8  ;;  %s402_s16 = scalar_lea.hbm %s704_s0, 16 }
  0x18   : > { %p398_p2 = scmp.ne.s32.totalorder %s396_s6, %s397_s7  ;;  %p403_p5 = scmp.lt.s32.totalorder %s396_s6, %s704_s0 }
  0x19   : > { %p404_p8 = scmp.lt.s32.totalorder %s402_s16, %s397_s7 }
  0x1a   : > { %p400_p4 = pnand %p399_p3, %p398_p2 }
  0x1b   : > { %p405_p10 = por %p404_p8, %p403_p5 }
  0x1c   : > { %p401_p7 = pneg %p400_p4 }
  0x1e   : > { %p406_p9 = pnand %p405_p10, %p401_p7 }
  0x20   : > { %409 = shalt.err (!%p406_p9)
}
  0x21   : > { %353 = dma.hbm_to_vmem [thread:$0]  (!%p610_p13), %s128_s29, 128, %s130_s3, %s118_s5  }
  0x22   : > { %p634_p2 = pnand %p336_p0, %p153_p1  ;;  %s144_s30 = scalar_lea.hbm %s705_s1, %s333_s24 }
  0x23   : > { %s146_s6 = sshll.u32 %s144_s30, 4  ;;  %s140_s7 = scalar_lea.vmem [#allocation5], %s332_s25  ;;  %s147_s6 = int_to_ptr.hbm [resolvable:$true] %s146_s6 }
  0x24   : > { %s148_s8 = sshll.u32 %s140_s7, 4  ;;  %s137_s14 = scalar_lea.sflag [#allocation6], %s601_s23  ;;  %s149_s8 = int_to_ptr.vmem [resolvable:$true] %s148_s8 }
  0x25   : > { %s425_s16 = sshra.s32 %s147_s6, 4  ;;  %s432_s5 = scalar_lea.hbm %s705_s1, 16  ;;  %s426_s16 = int_to_ptr.hbm [resolvable:$true] %s425_s16 }
  0x26   : > { %s427_s17 = scalar_lea.hbm %s426_s16, 8  ;;  %p433_p4 = scmp.lt.s32.totalorder %s426_s16, %s705_s1 }
  0x27   : > { %p428_p9 = scmp.ne.s32.totalorder %s426_s16, %s427_s17  ;;  %p434_p7 = scmp.lt.s32.totalorder %s432_s5, %s427_s17 }
  0x29   : > { %p430_p0 = pnand %p428_p9, %p399_p3  ;;  %p435_p5 = por %p434_p7, %p433_p4 }
  0x2b   : > { %p431_p1 = pneg %p430_p0 }
  0x2d   : > { %p436_p8 = pnand %p435_p5, %p431_p1 }
  0x2f   : > { %439 = shalt.err (!%p436_p8)
}
  0x30   : > { %356 = dma.hbm_to_vmem [thread:$0]  (!%p610_p13), %s147_s6, 128, %s149_s8, %s137_s14  }
  0x31   : > { %157 = sbr.rel (%p634_p2) target bundleno = 366 (0x16e), region = 28  ;;  %s656_s23 = sand.u32 (!%p634_p2), 1, %s517_s10  }
  0x32   : > { %s337_s25 = sshll.u32 (!%p634_p2), %s656_s23, 3  ;;  %s160_s27 = scalar_lea.sflag (!%p634_p2), [#allocation3], %s656_s23 }
  0x33   : > { %s163_s28 = scalar_lea.vmem (!%p634_p2), [#allocation2], %s337_s25 }
  0x36   : > { %500 = dma.done.wait (%p585_p6), %s160_s27, 128  }
  0x37   : > { %502 = vsyncadd (%p585_p6), %s160_s27, 4294967168  ;;  %s170_s4 = scalar_lea.sflag [#allocation6], %s656_s23  ;;  %s173_s30 = scalar_lea.vmem [#allocation5], %s337_s25 }
  0x38   : > { %504 = dma.done.wait (%p585_p6), %s170_s4, 128  }
  0x39   : > { %506 = vsyncadd (%p585_p6), %s170_s4, 4294967168  ;;  %v199_v0 = vld [vmem:[%s163_s28] sm:$0xff]  ;;  %v200_v1 = vld [vmem:[%s173_s30] sm:$0xff]  ;;  %v208_v4 = vlaneseq  ;;  %s339_s26 = sshll.u32 %s563_s13, 3  ;;  %vm214_vm1 = vcmask 7168   ;;  %s236_s7 = scalar_lea.hbm %s706_s2, %s563_s13 }
  0x3a   : > { %v201_v2 = vsub.f32 %v199_v0, %v200_v1  ;;  %v210_v6 = vstv %s339_s26  ;;  %s198_s8 = scalar_lea.vmem [#allocation7], %s656_s23  ;;  %s240_s16 = sshll.u32 %s236_s7, 4  ;;  %s241_s16 = int_to_ptr.hbm [resolvable:$true] %s240_s16 }
  0x3b   : > { %v209_v5 = vshrl.u32 %v208_v4, 7  ;;  %s238_s14 = sshll.u32 %s198_s8, 4  ;;  %s228_s29 = scalar_lea.sflag [#allocation4], %s656_s23  ;;  %s239_s14 = int_to_ptr.vmem [resolvable:$true] %s238_s14 }
  0x3c   : > { %v202_v3 = vmul.f32 %v201_v2, %v201_v2  ;;  %s469_s3 = sshra.s32 %s241_s16, 4  ;;  %s475_s13 = scalar_lea.hbm %s706_s2, 2  ;;  %s470_s3 = int_to_ptr.hbm [resolvable:$true] %s469_s3 }
  0x3d   : > { %v211_v7 = vadd.s32 %v210_v6, %v209_v5  ;;  %s471_s5 = scalar_lea.hbm %s470_s3, 1  ;;  %p476_p10 = scmp.lt.s32.totalorder %s470_s3, %s706_s2 }
  0x3e   : > { %203 = vadd.xlane.f32.xlu0 %v202_v3  ;;  %p472_p6 = scmp.ne.s32.totalorder %s470_s3, %s471_s5  ;;  %p477_p2 = scmp.lt.s32.totalorder %s475_s13, %s471_s5 }
  0x3f   : > { %vm212_vm0 = vcmp.lt.s32.totalorder %v211_v7, 12 }
  0x40   : > { %p473_p13 = pnand %p472_p6, %p592_p11  ;;  %p478_p9 = por %p477_p2, %p476_p10 }
  0x42   : > { %p474_p3 = pneg %p473_p13 }
  0x44   : > { %p479_p0 = pnand %p478_p9, %p474_p3 }
  0xb1   : > { %v204_v8 = vpop.xlane.xlu0 %203 }
  0xb2   : > { %v205_v9 = vmax.f32 %v204_v8, 1e-12 }
  0xb4   : > { %v206_v10 = vmin.f32 %v205_v9, 1e+12 }
  0xb6   : > { %v213_v11 = vsel %vm212_vm0, %v206_v10, 0.0 }
  0xb7   : > { %v215_v12 = vsel %vm214_vm1, %v213_v11, 0.0 }
  0xb8   : > { %216 = vadd.xlane.f32.xlu0 %v215_v12 }
 0x12b   : > { %v217_v13 = vpop.xlane.xlu0 %216 }
 0x12c   : > { %v218_v14 = vrot.slane %v217_v13, 4 }
 0x12e   : > { %v219_v15 = vadd.f32 %v218_v14, %v217_v13 }
 0x130   : > { %v220_v16 = vrot.slane %v219_v15, 2 }
 0x132   : > { %v221_v17 = vadd.f32 %v220_v16, %v219_v15 }
 0x134   : > { %v222_v18 = vrot.slane %v221_v17, 1 }
 0x136   : > { %v223_v19 = vadd.f32 %v222_v18, %v221_v17 }
 0x138   : > { %342 = vpush %v223_v19 }
 0x169   : > { %s343_s17 = spop %342 }
 0x16a   : > { %v225_v20 = vstv %s343_s17 }
 0x16b   : > { %226 = vst [vmem:[%s198_s8] sm:$0x1] %v225_v20 }
 0x16c   : > { %482 = shalt.err (!%p479_p0)
}
 0x16d   : > { %348 = dma.vmem_to_hbm [thread:$0]  (%p592_p11), %s239_s14, 16, %s241_s16, %s228_s29  }
 0x16e PF: > { %s252_s23 = sand.u32 1, %s513_s9   ;;  %p713_p1 = scmp.ge.s32.totalorder %s525_s12, 2 }
 0x16f   : > { %s253_s28 = scalar_lea.sflag [#allocation4], %s252_s23 }
 0x170   : > { %p358_p4 = pnand %p713_p1, %p596_p12 }
 0x172   : > { %p359_p7 = pneg %p358_p4 }
 0x174   : > { %508 = dma.done.wait (%p359_p7), %s253_s28, 16  }
 0x175   : > { %510 = vsyncadd (%p359_p7), %s253_s28, 4294967280  ;;  %p18_p5 = scmp.ge.s32.totalorder %s567_s15, 4   ;;  %s714_s9 = smov %s517_s10 }
 0x176   : > { %s715_s10 = smov %s521_s11  ;;  %s716_s11 = smov %s579_s18 }
 0x177   : > { %s717_s12 = smov %s567_s15  ;;  %20 = sbr.rel (!%p18_p5) target bundleno = 7 (0x7), region = 86 }
 0x17c   :  { %258 = vsyncpa [#allocation3], 1 }
 0x17d   :  { %260 = vsyncpa [#allocation3 + $0x1], 1 }
 0x17e   :  { %261 = vsyncpa [#allocation6], 1 }
 0x17f   :  { %263 = vsyncpa [#allocation6 + $0x1], 1 }
 0x180   :  { %264 = vsyncpa [#allocation4], 1 }
 0x181   :  { %266 = vsyncpa [#allocation4 + $0x1], 1 }

</bundles_post_ra>
